<compile_context>
chip_gen: v7x
topology: tpu7x:2x2x1
jax: 0.10.0
libtpu: 0.0.40
codegen_flags: <defaults>
</compile_context>

<pallas_src>
import functools

import jax
import jax.numpy as jnp
import numpy as np
from jax.experimental import pallas as pl
from jax.experimental.pallas import tpu as pltpu

EPS = 1e-6  # `eps` is an undefined global in the PyTorch reference; assume a small epsilon.


def _round_up(a, m):
    return (a + m - 1) // m * m


def _min_sublane(dtype):
    # Minimum packed sublane tile for the second-to-last dim.
    return {4: 8, 2: 16, 1: 32}.get(jnp.dtype(dtype).itemsize, 8)


def bcos_dense_kernel(x_ref, wt_ref, invw_ref, invx_ref, o_ref, acc_ref, *, b):
    """One (i, j, k) step of out = bcos(linear(x, w / ||w||)), K innermost."""
    k = pl.program_id(2)
    nk = pl.num_programs(2)

    @pl.when(k == 0)
    def _():
        acc_ref[...] = jnp.zeros_like(acc_ref)

    # MXU matmul in the operands' native dtype with f32 accumulation.
    acc_ref[...] += jnp.dot(x_ref[...], wt_ref[...],
                            preferred_element_type=jnp.float32)

    @pl.when(k == nk - 1)
    def _():
        # invw folds 1/scale and invx folds scale, so abs_cos is the true cosine
        # magnitude while `out` is already the reference's `linear / scale`.
        out = acc_ref[...] * invw_ref[...]          # (tm, tn) * (1, tn)
        abs_cos = jnp.abs(out * invx_ref[...])      # (tm, tn) * (tm, 1)

        bm1 = b - 1.0
        if bm1 == 0.0:
            res = out
        elif bm1 == 1.0:                            # b == 2: single VPU multiply
            res = out * abs_cos
        elif bm1 > 0.0 and float(bm1).is_integer():
            f = abs_cos
            for _ in range(int(bm1) - 1):
                f = f * abs_cos
            res = out * f
        else:
            # EUP path for non-integer exponents; clamp only for b < 1 where
            # abs_cos == 0 would produce inf.
            base = jnp.maximum(abs_cos, 1e-30) if bm1 < 0.0 else abs_cos
            res = out * jnp.exp(bm1 * jnp.log(base))
        o_ref[...] = res.astype(o_ref.dtype)


def _choose_tiles(bs, inc, outc, dtype):
    sub = _min_sublane(dtype)
    mp0 = _round_up(bs, sub)
    np0 = _round_up(outc, 128)
    kp0 = _round_up(inc, 128)

    tm = min(512, mp0)
    tn = min(512, np0)
    tk = min(1024, kp0)

    # v7x has 2 TensorCores: if the M grid collapses to one tile, split N into >= 2
    # tiles (when there is room) so the "parallel" axes still shard across cores.
    if mp0 // tm == 1 and np0 // tn < 2 and np0 >= 256:
        tn = _round_up((np0 + 1) // 2, 128)

    mp = _round_up(mp0, tm)
    npad = _round_up(np0, tn)
    kp = _round_up(kp0, tk)
    return tm, tn, tk, mp, npad, kp


def prepare_bcos_weight(w, *, scale, npad, kpad):
    """One-time weight prep (cacheable across calls): transposed + zero-padded (K, N)
    weight and per-column 1/||w_row|| with 1/scale folded in."""
    outc, inc = w.shape
    w32 = w.astype(jnp.float32)
    # No eps on the weight norm, matching the PyTorch reference (NormedDense).
    inv_wnorm = (1.0 / jnp.sqrt(jnp.sum(w32 * w32, axis=1))) * (1.0 / scale)
    wt = w.T
    if (inc, outc) != (kpad, npad):
        wt = jnp.zeros((kpad, npad), w.dtype).at[:inc, :outc].set(wt)
        invw = jnp.ones((1, npad), jnp.float32).at[0, :outc].set(inv_wnorm)
    else:
        invw = inv_wnorm.reshape(1, outc)
    return wt, invw


def bcos_dense(x, w, *, b, scale, eps=EPS, compute_dtype=None):
    """x: (bs, in_features); w: (outc, in_features) raw (un-normalized) weight."""
    if compute_dtype is not None:
        # Optional low-precision MXU operands (e.g. bf16): halves HBM traffic and
        # ~4x MXU rate on v6e/v7x; the f32 accumulator/epilogue keep the numerics.
        x = x.astype(compute_dtype)
        w = w.astype(compute_dtype)

    bs, inc = x.shape
    outc = w.shape[0]
    out_dtype = x.dtype

    tm, tn, tk, mp, npad, kp = _choose_tiles(bs, inc, outc, x.dtype)

    # Per-row inverse x-norm (with `scale` folded in), precomputed once instead of
    # redundantly reducing x^2 inside every (j, k) grid step.
    x32 = x.astype(jnp.float32)
    inv_xnorm = (1.0 / jnp.sqrt(jnp.sum(x32 * x32, axis=1, keepdims=True) + eps)) * scale

    xp = x
    invx = inv_xnorm
    if (bs, inc) != (mp, kp):
        xp = jnp.zeros((mp, kp), x.dtype).at[:bs, :inc].set(x)
    if bs != mp:
        invx = jnp.ones((mp, 1), jnp.float32).at[:bs].set(inv_xnorm)

    # TODO(synk): in a real model the prepared weight (wtp, invw) is static -- hoist
    # this call out of the hot path and cache it next to the parameters.
    wtp, invw = prepare_bcos_weight(w, scale=scale, npad=npad, kpad=kp)

    grid = (mp // tm, npad // tn, kp // tk)
    gm, gn, gk = grid

    xi = jnp.dtype(xp.dtype).itemsize
    wi = jnp.dtype(wtp.dtype).itemsize
    oi = jnp.dtype(out_dtype).itemsize
    nonint_b = not float(b - 1.0).is_integer()
    cost = pl.CostEstimate(
        flops=2 * mp * kp * npad,
        transcendentals=(2 * mp * npad) if nonint_b else 0,
        bytes_accessed=(mp * kp * xi * gn              # x re-streamed once per N tile
                        + kp * npad * wi * gm          # w^T re-streamed once per M tile
                        + mp * npad * oi               # output written once
                        + (npad + mp) * 4 * gm * gn),  # scale vectors (tiny)
    )

    kernel = functools.partial(bcos_dense_kernel, b=float(b))

    out_p = pl.pallas_call(
        kernel,
        out_shape=jax.ShapeDtypeStruct((mp, npad), out_dtype),
        grid_spec=pltpu.PrefetchScalarGridSpec(
            num_scalar_prefetch=0,
            grid=grid,
            in_specs=[
                pl.BlockSpec((tm, tk), lambda i, j, k: (i, k)),   # x tile
                pl.BlockSpec((tk, tn), lambda i, j, k: (k, j)),   # w^T tile
                pl.BlockSpec((1, tn), lambda i, j, k: (0, j)),    # (1/||w||)/scale
                pl.BlockSpec((tm, 1), lambda i, j, k: (i, 0)),    # scale/||x||
            ],
            out_specs=pl.BlockSpec((tm, tn), lambda i, j, k: (i, j)),
            scratch_shapes=[pltpu.VMEM((tm, tn), jnp.float32)],   # f32 accumulator
        ),
        compiler_params=pltpu.CompilerParams(
            dimension_semantics=("parallel", "parallel", "arbitrary"),
            vmem_limit_bytes=64 * 1024 * 1024),
        cost_estimate=cost,
    )(xp, wtp, invw, invx)

    return out_p[:bs, :outc]


def bcos_dense_ref(x, w, *, b, scale, eps=EPS):
    # Pure-JAX reference mirroring the PyTorch forward (max_out == 1 path).
    w_norm = w / jnp.linalg.norm(w, axis=1, keepdims=True)
    out = jnp.matmul(x, w_norm.T, precision=jax.lax.Precision.HIGHEST)
    norm = jnp.sqrt(jnp.sum(x ** 2, axis=1, keepdims=True) + eps)
    abs_cos = jnp.abs(out / norm)
    return out * abs_cos ** (b - 1.0) / scale


if __name__ == "__main__":
    # Module hyper-parameters (BCosDense.__init__).
    in_features = 32
    out_features = 8
    max_out = 1                           # default; see TODO below
    b = 2.0
    outc = out_features + max_out         # self.outc
    scale = np.sqrt(in_features) / 100.0  # default scale = sqrt(inc) / scale_fact

    # TODO(synk): the max_out > 1 branch in the reference reshapes to
    # (bs, -1, max_out, s), which is shape-inconsistent; only the default
    # max_out == 1 path is implemented.

    key = jax.random.PRNGKey(0)
    kx, kw = jax.random.split(key)
    bs = 2
    x = jax.random.normal(kx, (bs, in_features), dtype=jnp.float32)
    # Deterministic nn.Linear-style init: U(-1/sqrt(in), 1/sqrt(in)).
    bound = 1.0 / np.sqrt(in_features)
    w = jax.random.uniform(kw, (outc, in_features), dtype=jnp.float32,
                           minval=-bound, maxval=bound)

    y = bcos_dense(x, w, b=b, scale=scale)
    y = jax.block_until_ready(y)

    y_ref = bcos_dense_ref(x, w, b=b, scale=scale)
    assert y.shape == (bs, outc)
    np.testing.assert_allclose(np.asarray(y), np.asarray(y_ref), rtol=1e-3, atol=1e-3)
    print("KERNEL_OK")
</pallas_src>

<mosaic_0001>
module attributes {stable_mosaic.version = 11 : i64} {
  func.func @bcos_dense_kernel(%arg0: i32, %arg1: i32, %arg2: i32, %arg3: memref<8x128xf32, #tpu.memory_space<vmem>>, %arg4: memref<128x128xf32, #tpu.memory_space<vmem>>, %arg5: memref<1x128xf32, #tpu.memory_space<vmem>>, %arg6: memref<8x1xf32, #tpu.memory_space<vmem>>, %arg7: memref<8x128xf32, #tpu.memory_space<vmem>>, %arg8: memref<8x128xf32, #tpu.memory_space<vmem>>) attributes {dimension_semantics = [#tpu.dimension_semantics<parallel>, #tpu.dimension_semantics<parallel>, #tpu.dimension_semantics<arbitrary>], iteration_bounds = array<i64: 1, 1, 1>, scalar_prefetch = 0 : i64, scratch_operands = 1 : i64, tpu.core_type = #tpu.core_type<tc>, window_params = [{transform_indices = @transform_0, window_bounds = array<i64: 8, 128>}, {transform_indices = @transform_1, window_bounds = array<i64: 128, 128>}, {transform_indices = @transform_2, window_bounds = array<i64: 1, 128>}, {transform_indices = @transform_3, window_bounds = array<i64: 8, 1>}, {transform_indices = @transform_4, window_bounds = array<i64: 8, 128>}]} {
    %c0_i32 = arith.constant 0 : i32
    %0 = arith.cmpi eq, %arg2, %c0_i32 : i32
    %1 = arith.extui %0 : i1 to i32
    %c0_i32_0 = arith.constant 0 : i32
    %2 = arith.cmpi ne, %1, %c0_i32_0 : i32
    scf.if %2 {
      %cst_10 = arith.constant 0.000000e+00 : f32
      %12 = vector.broadcast %cst_10 : f32 to vector<8x128xf32>
      %c0_11 = arith.constant 0 : index
      %c0_12 = arith.constant 0 : index
      %13 = vector.load %arg8[%c0_11, %c0_12] : memref<8x128xf32, #tpu.memory_space<vmem>>, vector<8x128xf32>
      tpu.vector_store %arg8[%c0_11, %c0_12], %12 {strides = array<i32>} : memref<8x128xf32, #tpu.memory_space<vmem>>, vector<8x128xf32>,
    } else {
    }
    %c0 = arith.constant 0 : index
    %c0_1 = arith.constant 0 : index
    %3 = vector.load %arg8[%c0, %c0_1] : memref<8x128xf32, #tpu.memory_space<vmem>>, vector<8x128xf32>
    %c0_2 = arith.constant 0 : index
    %c0_3 = arith.constant 0 : index
    %4 = vector.load %arg3[%c0_2, %c0_3] : memref<8x128xf32, #tpu.memory_space<vmem>>, vector<8x128xf32>
    %c0_4 = arith.constant 0 : index
    %c0_5 = arith.constant 0 : index
    %5 = vector.load %arg4[%c0_4, %c0_5] : memref<128x128xf32, #tpu.memory_space<vmem>>, vector<128x128xf32>
    %cst = arith.constant dense<0.000000e+00> : vector<8x128xf32>
    %6 = tpu.matmul %4, %5, %cst {dimension_numbers = #tpu.dot_dimension_numbers<[1], [0], [0], [1], [0, 0, 1, 1], [], []>} : vector<8x128xf32>, vector<128x128xf32>, vector<8x128xf32> -> vector<8x128xf32>
    %7 = arith.addf %3, %6 : vector<8x128xf32>
    %c0_6 = arith.constant 0 : index
    %c0_7 = arith.constant 0 : index
    %8 = vector.load %arg8[%c0_6, %c0_7] : memref<8x128xf32, #tpu.memory_space<vmem>>, vector<8x128xf32>
    tpu.vector_store %arg8[%c0_6, %c0_7], %7 {strides = array<i32>} : memref<8x128xf32, #tpu.memory_space<vmem>>, vector<8x128xf32>,
    %c0_i32_8 = arith.constant 0 : i32
    %9 = arith.cmpi eq, %arg2, %c0_i32_8 : i32
    %10 = arith.extui %9 : i1 to i32
    %c0_i32_9 = arith.constant 0 : i32
    %11 = arith.cmpi ne, %10, %c0_i32_9 : i32
    scf.if %11 {
      %c0_10 = arith.constant 0 : index
      %c0_11 = arith.constant 0 : index
      %12 = vector.load %arg8[%c0_10, %c0_11] : memref<8x128xf32, #tpu.memory_space<vmem>>, vector<8x128xf32>
      %c0_12 = arith.constant 0 : index
      %c0_13 = arith.constant 0 : index
      %13 = vector.load %arg5[%c0_12, %c0_13] : memref<1x128xf32, #tpu.memory_space<vmem>>, vector<1x128xf32>
      %14 = vector.broadcast %13 : vector<1x128xf32> to vector<8x128xf32>
      %15 = arith.mulf %12, %14 : vector<8x128xf32>
      %c0_14 = arith.constant 0 : index
      %c0_15 = arith.constant 0 : index
      %16 = vector.load %arg6[%c0_14, %c0_15] : memref<8x1xf32, #tpu.memory_space<vmem>>, vector<8x1xf32>
      %17 = vector.broadcast %16 : vector<8x1xf32> to vector<8x128xf32>
      %18 = arith.mulf %15, %17 : vector<8x128xf32>
      %19 = math.absf %18 : vector<8x128xf32>
      %20 = arith.mulf %15, %19 : vector<8x128xf32>
      %c0_16 = arith.constant 0 : index
      %c0_17 = arith.constant 0 : index
      %21 = vector.load %arg7[%c0_16, %c0_17] : memref<8x128xf32, #tpu.memory_space<vmem>>, vector<8x128xf32>
      tpu.vector_store %arg7[%c0_16, %c0_17], %20 {strides = array<i32>} : memref<8x128xf32, #tpu.memory_space<vmem>>, vector<8x128xf32>,
    } else {
    }
    return
  }
  func.func @transform_0(%arg0: i32, %arg1: i32, %arg2: i32) -> (i32, i32) {
    %c0_i32 = arith.constant 0 : i32
    return %arg0, %arg2 : i32, i32
  }
  func.func @transform_1(%arg0: i32, %arg1: i32, %arg2: i32) -> (i32, i32) {
    %c0_i32 = arith.constant 0 : i32
    return %arg2, %arg1 : i32, i32
  }
  func.func @transform_2(%arg0: i32, %arg1: i32, %arg2: i32) -> (i32, i32) {
    %c0_i32 = arith.constant 0 : i32
    %c0_i32_0 = arith.constant 0 : i32
    return %c0_i32, %arg1 : i32, i32
  }
  func.func @transform_3(%arg0: i32, %arg1: i32, %arg2: i32) -> (i32, i32) {
    %c0_i32 = arith.constant 0 : i32
    %c0_i32_0 = arith.constant 0 : i32
    return %arg0, %c0_i32 : i32, i32
  }
  func.func @transform_4(%arg0: i32, %arg1: i32, %arg2: i32) -> (i32, i32) {
    %c0_i32 = arith.constant 0 : i32
    return %arg0, %arg1 : i32, i32
  }
}

</mosaic_0001>

<bundles_post_ra>
// kernel: tpu_custom_call.1
= control target key start
LH: loop header
LB: loop body
LE: loop exit
PB: predicated region body
PF: predicated region fallthrough
CT: control target
= control target key end

     0   :  { %9 = vsyncpa [#allocation4], 0  ;;  %s504_s0 = inlined_call_operand.hbm [shape: f32[8,128], index: 0, kind: input, shape index: {}]   ;;  %s505_s1 = inlined_call_operand.hbm [shape: f32[128,128], index: 1, kind: input, shape index: {}]   ;;  %s506_s2 = inlined_call_operand.hbm [shape: f32[1,128], index: 2, kind: input, shape index: {}]   ;;  %s507_s3 = inlined_call_operand.hbm [shape: f32[8,1], index: 3, kind: input, shape index: {}]   ;;  %s508_s4 = inlined_call_operand.hbm [shape: f32[8,128], index: 4, kind: output, shape index: {}]  }
   0x1   :  { %10 = vsyncpa [#allocation7], 0 }
   0x2   :  { %11 = vsyncpa [#allocation10], 0 }
   0x3   :  { %12 = vsyncpa [#allocation5], 0  ;;  %s408_s15 = smov [#allocation6]   ;;  %s290_s19 = scalar_lea.hbm %s505_s1, 2048 }
   0x4   :  { %s28_s16 = sshll.u32 %s408_s15, 4  ;;  %p291_p0 = scmp.ne.s32.totalorder %s505_s1, %s290_s19  ;;  %s29_s16 = int_to_ptr.vmem [resolvable:$true] %s28_s16 }
   0x5   :  { %p294_p1 = scmp.lt.u32.totalorder %s290_s19, %s505_s1 }
   0x7   :  { %p296_p2 = pnand %p294_p1, %p291_p0 }
   0x9   :  { %299 = shalt.err (!%p296_p2)
}
   0xa   :  { %s300_s24 = scalar_lea.vmem %s29_s16, 2048  ;;  %p305_p4 = scmp.lt.s32.totalorder %s29_s16, %s29_s16 }
   0xb   :  { %p301_p3 = scmp.ne.s32.totalorder %s29_s16, %s300_s24  ;;  %p306_p5 = scmp.lt.s32.totalorder %s300_s24, %s300_s24 }
   0xd   :  { %p307_p6 = por %p306_p5, %p305_p4 }
   0xf   :  { %p308_p7 = pnand %p307_p6, %p301_p3 }
  0x11   :  { %311 = shalt.err (!%p308_p7)
}
  0x12   :  { %s409_s25 = smov 128   ;;  %s410_s26 = smov 8  }
  0x13   :  { %34 = dma.hbm_to_vmem [thread:$0]  %s505_s1, 2048, %s29_s16, [#allocation7], %s409_s25, %s409_s25, %s410_s26  }
  0x14   :  { %s411_s29 = smov [#allocation3]   ;;  %s412_s5 = smov [#allocation8]  }
  0x15   :  { %s19_s30 = sshll.u32 %s411_s29, 4  ;;  %s41_s6 = sshll.u32 %s412_s5, 4  ;;  %s20_s30 = int_to_ptr.vmem [resolvable:$true] %s19_s30  ;;  %s42_s6 = int_to_ptr.vmem [resolvable:$true] %s41_s6 }
  0x16   :  { %s312_s9 = scalar_lea.hbm %s504_s0, 128 }
  0x17   :  { %p313_p8 = scmp.ne.s32.totalorder %s504_s0, %s312_s9  ;;  %p316_p9 = scmp.lt.u32.totalorder %s312_s9, %s504_s0 }
  0x19   :  { %p318_p10 = pnand %p316_p9, %p313_p8 }
  0x1b   :  { %321 = shalt.err (!%p318_p10)
}
  0x1c   :  { %s322_s1 = scalar_lea.vmem %s20_s30, 128  ;;  %p327_p12 = scmp.lt.s32.totalorder %s20_s30, %s20_s30 }
  0x1d   :  { %p323_p11 = scmp.ne.s32.totalorder %s20_s30, %s322_s1  ;;  %p328_p13 = scmp.lt.s32.totalorder %s322_s1, %s322_s1 }
  0x1f   :  { %p329_p0 = por %p328_p13, %p327_p12 }
  0x21   :  { %p330_p1 = pnand %p329_p0, %p323_p11 }
  0x23   :  { %333 = shalt.err (!%p330_p1)
}
  0x24   :  { %22 = dma.hbm_to_vmem [thread:$0]  %s504_s0, 128, %s20_s30, [#allocation4]  }
  0x25   :  { %s334_s18 = scalar_lea.hbm %s506_s2, 16 }
  0x26   :  { %p335_p2 = scmp.ne.s32.totalorder %s506_s2, %s334_s18  ;;  %p338_p3 = scmp.lt.u32.totalorder %s334_s18, %s506_s2 }
  0x28   :  { %p340_p4 = pnand %p338_p3, %p335_p2 }
  0x2a   :  { %343 = shalt.err (!%p340_p4)
}
  0x2b   :  { %s344_s23 = scalar_lea.vmem %s42_s6, 16  ;;  %s348_s24 = scalar_lea.vmem %s42_s6, 32 }
  0x2c   :  { %p345_p5 = scmp.ne.s32.totalorder %s42_s6, %s344_s23  ;;  %p349_p6 = scmp.lt.s32.totalorder %s42_s6, %s42_s6 }
  0x2d   :  { %p350_p7 = scmp.lt.s32.totalorder %s348_s24, %s344_s23 }
  0x2f   :  { %p351_p8 = por %p350_p7, %p349_p6 }
  0x31   :  { %p352_p9 = pnand %p351_p8, %p345_p5 }
  0x33   :  { %355 = shalt.err (!%p352_p9)
}
  0x34   :  { %44 = dma.hbm_to_vmem [thread:$0]  %s506_s2, 16, %s42_s6, [#allocation7]  }
  0x35   :  { %s413_s26 = smov [#allocation9]   ;;  %s356_s30 = scalar_lea.hbm %s507_s3, 128 }
  0x36   :  { %s51_s27 = sshll.u32 %s413_s26, 4  ;;  %p357_p10 = scmp.ne.s32.totalorder %s507_s3, %s356_s30  ;;  %s52_s27 = int_to_ptr.vmem [resolvable:$true] %s51_s27 }
  0x37   :  { %p360_p11 = scmp.lt.u32.totalorder %s356_s30, %s507_s3 }
  0x39   :  { %p362_p12 = pnand %p360_p11, %p357_p10 }
  0x3b   :  { %365 = shalt.err (!%p362_p12)
}
  0x3c   :  { %s366_s10 = scalar_lea.vmem %s52_s27, 128  ;;  %p371_p0 = scmp.lt.s32.totalorder %s52_s27, %s52_s27 }
  0x3d   :  { %p367_p13 = scmp.ne.s32.totalorder %s52_s27, %s366_s10  ;;  %p372_p1 = scmp.lt.s32.totalorder %s366_s10, %s366_s10 }
  0x3f   :  { %p373_p2 = por %p372_p1, %p371_p0 }
  0x41   :  { %p374_p3 = pnand %p373_p2, %p367_p13 }
  0x43   :  { %377 = shalt.err (!%p374_p3)
}
  0x44   :  { %54 = dma.hbm_to_vmem [thread:$0]  %s507_s3, 128, %s52_s27, [#allocation10]  }
  0x45   :  { %400 = dma.done.wait [#allocation4], 128  }
  0x46   :  { %401 = vsyncadd [#allocation4], 4294967168 }
  0x47   :  { %402 = dma.done.wait [#allocation7], 2064  }
  0x48   :  { %403 = vsyncadd [#allocation7], 4294965232 }
  0x49   :  { %404 = dma.done.wait [#allocation10], 128  }
  0x4a   :  { %405 = vsyncadd [#allocation10], 4294967168  ;;  %v414_v0 = vmov 0.0|0.0   ;;  %vm415_vm0 = vmmov 0   ;;  %v416_v1 = vmov 0.0   ;;  %v417_v2 = vmov 0  }
  0x4b   :  { %254 = vmatprep.subr.bf16.mxu0 %v414_v0  ;;  %251 = vmatprep.mubr.msk.f32.mxu0 %vm415_vm0, %v416_v1  ;;  %v74_v3 = vld [vmem:[#allocation6] sm:$0xff]  ;;  %v75_v4 = vld [vmem:[#allocation6 + $0x8] sm:$0xff]  ;;  %v76_v5 = vld [vmem:[#allocation6 + $0x10] sm:$0xff]  ;;  %s418_s3 = smov [#allocation11]  }
  0x4c   :  { %289 = vset.pattern.permute.xlu0 %v417_v2  ;;  %v255_v6 = vpack.c.bf16 %v75_v4, %v74_v3  ;;  %v77_v7 = vld [vmem:[#allocation6 + $0x18] sm:$0xff]  ;;  %v78_v9 = vld [vmem:[#allocation6 + $0x20] sm:$0xff]  ;;  %v79_v10 = vld [vmem:[#allocation6 + $0x28] sm:$0xff]  ;;  %s190_s11 = sshll.u32 %s418_s3, 4  ;;  %s191_s11 = int_to_ptr.vmem [resolvable:$true] %s190_s11 }
  0x4d   :  { %v258_v8 = vpack.c.bf16 %v77_v7, %v76_v5  ;;  %v174_v11 = vld [vmem:[#allocation9] sm:$0xff]  ;;  %v261_v12 = vpack.c.bf16 %v79_v10, %v78_v9  ;;  %v80_v13 = vld [vmem:[#allocation6 + $0x30] sm:$0xff]  ;;  %v81_v14 = vld [vmem:[#allocation6 + $0x38] sm:$0xff]  ;;  %s378_s12 = scalar_lea.vmem %s191_s11, 128  ;;  %p383_p5 = scmp.lt.s32.totalorder %s191_s11, %s191_s11 }
  0x4e   :  { %256 = vmatpush3.bf16.msra.mxu0 %v255_v6  ;;  %177 = vperm.xlu0 %289, %v174_v11   ;;  %v264_v15 = vpack.c.bf16 %v81_v14, %v80_v13  ;;  %v82_v16 = vld [vmem:[#allocation6 + $0x40] sm:$0xff]  ;;  %v83_v17 = vld [vmem:[#allocation6 + $0x48] sm:$0xff]  ;;  %v84_v19 = vld [vmem:[#allocation6 + $0x50] sm:$0xff]  ;;  %p379_p4 = scmp.ne.s32.totalorder %s191_s11, %s378_s12  ;;  %p384_p6 = scmp.lt.s32.totalorder %s378_s12, %s378_s12 }
  0x4f   :  { %257 = vmatprep.subr.bf16.mxu0 %v414_v0  ;;  %v267_v18 = vpack.c.bf16 %v83_v17, %v82_v16  ;;  %v85_v20 = vld [vmem:[#allocation6 + $0x58] sm:$0xff]  ;;  %v86_v22 = vld [vmem:[#allocation6 + $0x60] sm:$0xff]  ;;  %v87_v23 = vld [vmem:[#allocation6 + $0x68] sm:$0xff] }
  0x50   :  { %v270_v21 = vpack.c.bf16 %v85_v20, %v84_v19  ;;  %v273_v24 = vpack.c.bf16 %v87_v23, %v86_v22  ;;  %v88_v25 = vld [vmem:[#allocation6 + $0x70] sm:$0xff]  ;;  %v89_v26 = vld [vmem:[#allocation6 + $0x78] sm:$0xff]  ;;  %v201_v29 = vld [vmem:[#allocation8] ss:$0 sm:$0xff]  ;;  %p385_p7 = por %p384_p6, %p383_p5 }
  0x51   :  { %v276_v27 = vpack.c.bf16 %v89_v26, %v88_v25  ;;  %v73_v28 = vld [vmem:[#allocation3] sm:$0xff] }
  0x52   :  { %259 = vmatpush3.bf16.msra.mxu0 %v258_v8  ;;  %p386_p8 = pnand %p385_p7, %p379_p4 }
  0x53   :  { %260 = vmatprep.subr.bf16.mxu0 %v414_v0 }
  0x56   :  { %262 = vmatpush3.bf16.msra.mxu0 %v261_v12 }
  0x57   :  { %263 = vmatprep.subr.bf16.mxu0 %v414_v0 }
  0x5a   :  { %265 = vmatpush3.bf16.msra.mxu0 %v264_v15 }
  0x5b   :  { %266 = vmatprep.subr.bf16.mxu0 %v414_v0 }
  0x5e   :  { %268 = vmatpush3.bf16.msra.mxu0 %v267_v18 }
  0x5f   :  { %269 = vmatprep.subr.bf16.mxu0 %v414_v0 }
  0x62   :  { %271 = vmatpush3.bf16.msra.mxu0 %v270_v21 }
  0x63   :  { %272 = vmatprep.subr.bf16.mxu0 %v414_v0 }
  0x66   :  { %274 = vmatpush3.bf16.msra.mxu0 %v273_v24 }
  0x67   :  { %275 = vmatprep.subr.bf16.mxu0 %v414_v0 }
  0x6a   :  { %277 = vmatpush3.bf16.msra.mxu0 %v276_v27 }
  0x6d   :  { %252 = vmatmul.mubr.f32.vlgmr.msra.gmra.mrb[0].mxu0 %v73_v28 }
  0xcd   :  { %v178_v31 = vpop.permute.xlu0 %177 }
 0x140   :  { %v156_v30 = vpop.f32.mrb[0].mxu0 }
 0x141   :  { %v173_v32 = vmul.f32 %v201_v29, %v156_v30  ;;  %v253_v33 = vpop.f32.mrb[1].mxu0 }
 0x143   :  { %v180_v34 = vmul.f32 %v178_v31, %v173_v32 }
 0x145   :  { %v181_v35 = vand.u32 2147483647, %v180_v34 }
 0x147   :  { %v182_v36 = vmul.f32 %v181_v35, %v173_v32 }
 0x149   :  { %183 = vst [vmem:[#allocation11] sm:$0xff] %v182_v36 }
 0x14a   :  { %389 = shalt.err (!%p386_p8)
}
 0x14b   :  { %s390_s14 = scalar_lea.hbm %s508_s4, 128 }
 0x14c   :  { %p391_p9 = scmp.ne.s32.totalorder %s508_s4, %s390_s14  ;;  %p394_p10 = scmp.lt.u32.totalorder %s390_s14, %s508_s4 }
 0x14e   :  { %p396_p11 = pnand %p394_p10, %p391_p9 }
 0x150   :  { %399 = shalt.err (!%p396_p11)
}
 0x151   :  { %193 = dma.vmem_to_hbm [thread:$0]  %s191_s11, 128, %s508_s4, [#allocation5]  }
 0x152   :  { %406 = dma.done.wait [#allocation5], 128  }
 0x153   :  { %407 = vsyncadd [#allocation5], 4294967168 }
 0x154   :  { %197 = vsyncpa [#allocation4], 1 }
 0x155   :  { %198 = vsyncpa [#allocation7], 1 }
 0x156   :  { %199 = vsyncpa [#allocation10], 1 }
 0x157   :  { %200 = vsyncpa [#allocation5], 1 }

</bundles_post_ra>
